<compile_context>
chip_gen: v5e
topology: v5e:2x2
jax: 0.10.0
libtpu: 0.0.40
codegen_flags: <defaults>
</compile_context>

<pallas_src>
import functools

import jax
import jax.numpy as jnp
from jax.experimental import pallas as pl
from jax.experimental.pallas import tpu as pltpu

# ----------------------------------------------------------------------------
# Model hyper-parameters (small, consistent with the SwinJSCC forward).
# ----------------------------------------------------------------------------
PATCH = 2          # patch-embed patch size
E1 = 32            # stage-1 embed dim
E2 = 64            # stage-2 embed dim
HEADS1 = 2
HEADS2 = 4
WINDOW = 4         # window size (tokens per window = 16)
C_CODE = 8         # transmitted channel dimension ("C")
DOWNSAMPLE = 2     # two 2x spatial reductions -> total 4x

# approx reciprocal (EUP vrcp) only lowers through Mosaic; fall back to the
# exact form when the kernel is being interpreted on CPU.
_ON_TPU = jax.default_backend() == "tpu"


def _row_tile(m):
    """Single grid step for the small row counts used here; split only if big."""
    if m <= 512:
        return m
    for t in (512, 256, 128, 64):
        if m % t == 0:
            return t
    return m


def _layer_norm(x, g, b):
    mu = jnp.mean(x, axis=-1, keepdims=True)
    var = jnp.mean(jnp.square(x - mu), axis=-1, keepdims=True)
    return (x - mu) * jax.lax.rsqrt(var + 1e-5) * g + b


# ----------------------------------------------------------------------------
# Fused (LayerNorm) + Linear (+ GELU) (+ residual) kernel
# ----------------------------------------------------------------------------
def _fused_linear_kernel(*refs, ln, act, residual):
    i = 0
    x_ref = refs[i]; i += 1
    if ln:
        g_ref, gb_ref = refs[i], refs[i + 1]; i += 2
    w_ref, b_ref = refs[i], refs[i + 1]; i += 2
    if residual:
        r_ref = refs[i]; i += 1
    o_ref = refs[i]

    x = x_ref[...].astype(jnp.float32)
    if ln:
        x = _layer_norm(x, g_ref[...], gb_ref[...])
    y = jnp.dot(x, w_ref[...], preferred_element_type=jnp.float32) + b_ref[...]
    if act == "gelu":
        # TODO(synk): PyTorch nn.GELU defaults to the exact erf form; tanh
        # approximation is used here (guaranteed Mosaic lowering).
        y = jax.nn.gelu(y, approximate=True)
    if residual:
        y = y + r_ref[...].astype(jnp.float32)
    o_ref[...] = y.astype(o_ref.dtype)


def fused_linear(x, w, b, *, ln=None, act="none", residual=None):
    """y = [residual +] act(LN?(x) @ w + b); x:(M,K) w:(K,N) b:(N,)."""
    M, K = x.shape
    N = w.shape[1]
    tm = _row_tile(M)
    row = lambda i: (i, 0)
    rep = lambda i: (0, 0)

    in_specs = [pl.BlockSpec((tm, K), row)]
    args = [x]
    if ln is not None:
        g, be = ln
        in_specs += [pl.BlockSpec((1, K), rep), pl.BlockSpec((1, K), rep)]
        args += [g.reshape(1, K), be.reshape(1, K)]
    in_specs += [pl.BlockSpec((K, N), rep), pl.BlockSpec((1, N), rep)]
    args += [w, b.reshape(1, N)]
    if residual is not None:
        in_specs.append(pl.BlockSpec((tm, N), row))
        args.append(residual)

    return pl.pallas_call(
        functools.partial(_fused_linear_kernel, ln=ln is not None, act=act,
                          residual=residual is not None),
        out_shape=jax.ShapeDtypeStruct((M, N), jnp.float32),
        grid=(M // tm,),
        in_specs=in_specs,
        out_specs=pl.BlockSpec((tm, N), row),
        compiler_params=pltpu.CompilerParams(dimension_semantics=("parallel",)),
    )(*args)


# ----------------------------------------------------------------------------
# Fused attention tail: x = res + attn@Wp + bp ; out = x + MLP(LN2(x))
# ----------------------------------------------------------------------------
def _proj_mlp_kernel(a_ref, res_ref, pw_ref, pb_ref, g_ref, b_ref,
                     w1_ref, b1_ref, w2_ref, b2_ref, o_ref):
    x = (res_ref[...].astype(jnp.float32)
         + jnp.dot(a_ref[...].astype(jnp.float32), pw_ref[...],
                   preferred_element_type=jnp.float32)
         + pb_ref[...])
    xn = _layer_norm(x, g_ref[...], b_ref[...])
    h = jnp.dot(xn, w1_ref[...], preferred_element_type=jnp.float32) + b1_ref[...]
    h = jax.nn.gelu(h, approximate=True)
    y = x + jnp.dot(h, w2_ref[...], preferred_element_type=jnp.float32) + b2_ref[...]
    o_ref[...] = y.astype(o_ref.dtype)


def proj_mlp(attn, res, p):
    M, D = attn.shape
    hidden = p["fc1_w"].shape[1]
    tm = _row_tile(M)
    row = lambda i: (i, 0)
    rep = lambda i: (0, 0)
    return pl.pallas_call(
        _proj_mlp_kernel,
        out_shape=jax.ShapeDtypeStruct((M, D), jnp.float32),
        grid=(M // tm,),
        in_specs=[
            pl.BlockSpec((tm, D), row),       # attention output
            pl.BlockSpec((tm, D), row),       # residual input
            pl.BlockSpec((D, D), rep),        # proj_w
            pl.BlockSpec((1, D), rep),        # proj_b
            pl.BlockSpec((1, D), rep),        # ln2_g
            pl.BlockSpec((1, D), rep),        # ln2_b
            pl.BlockSpec((D, hidden), rep),   # fc1_w
            pl.BlockSpec((1, hidden), rep),   # fc1_b
            pl.BlockSpec((hidden, D), rep),   # fc2_w
            pl.BlockSpec((1, D), rep),        # fc2_b
        ],
        out_specs=pl.BlockSpec((tm, D), row),
        compiler_params=pltpu.CompilerParams(dimension_semantics=("parallel",)),
    )(attn, res, p["proj_w"], p["proj_b"].reshape(1, D),
      p["ln2_g"].reshape(1, D), p["ln2_b"].reshape(1, D),
      p["fc1_w"], p["fc1_b"].reshape(1, hidden),
      p["fc2_w"], p["fc2_b"].reshape(1, D))


# ----------------------------------------------------------------------------
# Window attention: all windows & heads batched into ONE kernel invocation
# ----------------------------------------------------------------------------
def _wattn_kernel(q_ref, k_ref, v_ref, bias_ref, o_ref, *, scale, approx_recip):
    q = q_ref[...].astype(jnp.float32)          # (G, T, Dh), G = NW*heads
    k = k_ref[...].astype(jnp.float32)
    v = v_ref[...].astype(jnp.float32)
    s = jnp.einsum("gtd,gsd->gts", q, k,
                   preferred_element_type=jnp.float32) * scale + bias_ref[...]
    s = s - jnp.max(s, axis=-1, keepdims=True)
    p = jnp.exp(s)
    inv = pl.reciprocal(jnp.sum(p, axis=-1, keepdims=True), approx=approx_recip)
    p = p * inv
    o_ref[...] = jnp.einsum("gts,gsd->gtd", p, v).astype(o_ref.dtype)


def window_attention(q, k, v, bias):
    """q,k,v: (G, T, Dh), bias: (G, T, T) -> (G, T, Dh).  G is tiny here, so a
    single invocation holds everything in VMEM (no per-window grid steps)."""
    # TODO(synk): for large G (big images) tile over G with a parallel grid.
    G, T, Dh = q.shape
    scale = 1.0 / (Dh ** 0.5)
    return pl.pallas_call(
        functools.partial(_wattn_kernel, scale=scale, approx_recip=_ON_TPU),
        out_shape=jax.ShapeDtypeStruct((G, T, Dh), jnp.float32),
    )(q, k, v, bias)


# ----------------------------------------------------------------------------
# AWGN channel: pwr = 2*mean(x^2);  out = x + noise * sigma * sqrt(pwr)
# (algebraically identical to normalize -> add noise -> de-normalize)
# ----------------------------------------------------------------------------
def _channel_kernel(x_ref, n_ref, o_ref, *, sigma):
    x = x_ref[...].astype(jnp.float32)
    pwr = jnp.mean(x * x) * 2.0                 # avg complex-symbol power
    o_ref[...] = x + n_ref[...] * (sigma * jnp.sqrt(pwr))


def awgn_channel(feat, snr, noise_key):
    # lane-dense 2-D view of the coded feature: (B, L*C) with L*C a multiple
    # of 128 at these sizes.
    B = feat.shape[0]
    flat = feat.reshape(B, -1)
    sigma = float((1.0 / (2.0 * (10.0 ** (snr / 10.0)))) ** 0.5)
    # torch.randn equivalent (hardware PRNG has no CPU/interpret lowering).
    noise = jax.random.normal(noise_key, flat.shape, jnp.float32)
    # TODO(synk): tile with a grid + two-pass power reduction for features
    # that exceed the 32 MiB scoped-VMEM default (v7x: 64 MiB physical).
    out = pl.pallas_call(
        functools.partial(_channel_kernel, sigma=sigma),
        out_shape=jax.ShapeDtypeStruct(flat.shape, jnp.float32),
    )(flat, noise)
    return out.reshape(feat.shape)


# ----------------------------------------------------------------------------
# Fused clip + MSE reduction (one pass; both losses derived from it)
# ----------------------------------------------------------------------------
def _mse_kernel(a_ref, b_ref, o_ref):
    a = a_ref[...].astype(jnp.float32)
    r = jnp.clip(b_ref[...].astype(jnp.float32), 0.0, 1.0)
    d = a - r
    o_ref[0, 0] = jnp.mean(d * d)


def clipped_mse(inp, recon):
    a = inp.reshape(inp.shape[0], -1)
    b = recon.reshape(recon.shape[0], -1)
    # TODO(synk): at large resolutions tile over the lane axis with a VMEM
    # accumulator instead of a single full-array block.
    out = pl.pallas_call(
        _mse_kernel,
        out_shape=jax.ShapeDtypeStruct((1, 1), jnp.float32),
        in_specs=[pl.BlockSpec(a.shape, lambda: (0, 0)),
                  pl.BlockSpec(b.shape, lambda: (0, 0))],
        out_specs=pl.BlockSpec(memory_space=pltpu.MemorySpace.SMEM),
    )(a, b)
    return out[0, 0]


# ----------------------------------------------------------------------------
# Swin building blocks (glue around the kernels)
# ----------------------------------------------------------------------------
def _rel_pos_bias(table, window):
    coords = jnp.stack(
        jnp.meshgrid(jnp.arange(window), jnp.arange(window), indexing="ij"), 0
    ).reshape(2, -1)                                     # (2, T)
    rel = coords[:, :, None] - coords[:, None, :] + (window - 1)
    idx = rel[0] * (2 * window - 1) + rel[1]             # (T, T)
    T = window * window
    bias = jnp.take(table, idx.reshape(-1), axis=0).reshape(T, T, -1)
    return jnp.transpose(bias, (2, 0, 1)).astype(jnp.float32)   # (H, T, T)


def swin_block(x, p, Hn, Wn, heads, window):
    """x: (B, Hn*Wn, D) -> (B, Hn*Wn, D); non-shifted window attention block.

    Three pallas_calls per block: LN1+QKV, batched window attention,
    proj+residual+LN2+MLP+residual.
    """
    B, L, D = x.shape
    dh = D // heads
    w = window
    nwh, nww = Hn // w, Wn // w
    T = w * w
    NW = B * nwh * nww
    G = NW * heads

    xf = x.reshape(B * L, D)
    qkv = fused_linear(xf, p["qkv_w"], p["qkv_b"],
                       ln=(p["ln1_g"], p["ln1_b"]))           # (B*L, 3D)

    # window partition (plain-JAX glue).
    # TODO(synk): could be folded into the attention input DMA via index_map.
    qkv = qkv.reshape(B, nwh, w, nww, w, 3, heads, dh)
    qkv = jnp.transpose(qkv, (5, 0, 1, 3, 6, 2, 4, 7)).reshape(3, G, T, dh)
    q, k, v = qkv[0], qkv[1], qkv[2]

    bias = _rel_pos_bias(p["rel_table"], w)                   # (heads, T, T)
    bias = jnp.tile(bias, (NW, 1, 1))                         # (G, T, T)

    attn = window_attention(q, k, v, bias)                    # (G, T, dh)
    attn = attn.reshape(B, nwh, nww, heads, w, w, dh)
    attn = jnp.transpose(attn, (0, 1, 4, 2, 5, 3, 6)).reshape(B * L, D)

    out = proj_mlp(attn, xf, p)                               # fused tail
    return out.reshape(B, L, D)


def encode(params, x_img):
    B, C, H, W = x_img.shape
    p = PATCH
    H1, W1 = H // p, W // p
    H2, W2 = H1 // 2, W1 // 2

    # patch embed (conv k=stride=patch == im2col + matmul)
    x = x_img.reshape(B, C, H1, p, W1, p)
    x = jnp.transpose(x, (0, 2, 4, 3, 5, 1)).reshape(B * H1 * W1, p * p * C)
    x = fused_linear(x, params["embed_w"], params["embed_b"]).reshape(B, H1 * W1, E1)

    x = swin_block(x, params["enc1"], H1, W1, HEADS1, WINDOW)

    # patch merging (2x2 neighbors -> 4*E1 -> LN -> linear -> E2), LN fused.
    x = x.reshape(B, H2, 2, W2, 2, E1)
    x = jnp.transpose(x, (0, 1, 3, 2, 4, 5)).reshape(B * H2 * W2, 4 * E1)
    x = fused_linear(x, params["merge_w"], params["merge_b"],
                     ln=(params["merge_ln_g"], params["merge_ln_b"]))
    x = x.reshape(B, H2 * W2, E2)

    x = swin_block(x, params["enc2"], H2, W2, HEADS2, WINDOW)

    # rate head (LN fused) -> transmitted feature (B, L2, C_CODE)
    # TODO(synk): C_CODE=8 output is lane-sparse; a packed layout would make
    # this store lane-dense (minor at these sizes).
    feat = fused_linear(x.reshape(-1, E2), params["enc_head_w"],
                        params["enc_head_b"],
                        ln=(params["enc_head_ln_g"], params["enc_head_ln_b"]))
    return feat.reshape(B, H2 * W2, C_CODE)


def decode(params, feat, H, W):
    B = feat.shape[0]
    p = PATCH
    H1, W1 = H // p, W // p
    H2, W2 = H1 // 2, W1 // 2

    x = fused_linear(feat.reshape(-1, C_CODE),
                     params["dec_head_w"], params["dec_head_b"])
    x = x.reshape(B, H2 * W2, E2)
    x = swin_block(x, params["dec1"], H2, W2, HEADS2, WINDOW)

    # patch reverse-merging: LN+linear fused, then 2x spatial upsample.
    xf = fused_linear(x.reshape(-1, E2), params["up_w"], params["up_b"],
                      ln=(params["up_ln_g"], params["up_ln_b"]))
    x = xf.reshape(B, H2, W2, 2, 2, E1)
    x = jnp.transpose(x, (0, 1, 3, 2, 4, 5)).reshape(B, H1 * W1, E1)

    x = swin_block(x, params["dec2"], H1, W1, HEADS1, WINDOW)

    # final projection (LN fused) back to pixel patches, then NCHW
    xf = fused_linear(x.reshape(-1, E1), params["out_w"], params["out_b"],
                      ln=(params["out_ln_g"], params["out_ln_b"]))
    x = xf.reshape(B, H1, W1, p, p, 3)
    x = jnp.transpose(x, (0, 5, 1, 3, 2, 4)).reshape(B, 3, H, W)
    return x


# ----------------------------------------------------------------------------
# Full SwinJSCC forward  (SwinJSCC_w/o_SAandRA branch, pass_channel=True)
# ----------------------------------------------------------------------------
def swin_jscc_forward(params, input_image, given_SNR=10.0, noise_key=None):
    if noise_key is None:
        noise_key = jax.random.PRNGKey(0)
    B, _, H, W = input_image.shape
    chan_param = given_SNR

    feature = encode(params, input_image)
    CBR = feature.size / 2.0 / input_image.size

    noisy_feature = awgn_channel(feature, chan_param, noise_key)
    recon_image = decode(params, noisy_feature, H, W)

    # mse = MSE(input*255, clip(recon)*255).mean()  and  loss_G = MSE(input, clip(recon)).mean()
    # differ only by 255^2 -> one reduction kernel.
    loss_G = clipped_mse(input_image, recon_image)
    mse = loss_G * (255.0 * 255.0)
    return recon_image, CBR, chan_param, mse, loss_G


# ----------------------------------------------------------------------------
# Deterministic parameter initialization
# ----------------------------------------------------------------------------
def _dense(key, kin, kout):
    return (0.02 * jax.random.normal(key, (kin, kout), jnp.float32),
            jnp.zeros((kout,), jnp.float32))


def _init_block(key, dim, heads, window):
    ks = jax.random.split(key, 5)
    hidden = 4 * dim
    qkv_w, qkv_b = _dense(ks[0], dim, 3 * dim)
    proj_w, proj_b = _dense(ks[1], dim, dim)
    fc1_w, fc1_b = _dense(ks[2], dim, hidden)
    fc2_w, fc2_b = _dense(ks[3], hidden, dim)
    return dict(
        ln1_g=jnp.ones((dim,), jnp.float32), ln1_b=jnp.zeros((dim,), jnp.float32),
        qkv_w=qkv_w, qkv_b=qkv_b, proj_w=proj_w, proj_b=proj_b,
        ln2_g=jnp.ones((dim,), jnp.float32), ln2_b=jnp.zeros((dim,), jnp.float32),
        fc1_w=fc1_w, fc1_b=fc1_b, fc2_w=fc2_w, fc2_b=fc2_b,
        rel_table=0.02 * jax.random.normal(ks[4], ((2 * window - 1) ** 2, heads),
                                           jnp.float32),
    )


def init_params(key):
    ks = jax.random.split(key, 10)
    p = {}
    p["embed_w"], p["embed_b"] = _dense(ks[0], PATCH * PATCH * 3, E1)
    p["enc1"] = _init_block(ks[1], E1, HEADS1, WINDOW)
    p["merge_ln_g"] = jnp.ones((4 * E1,), jnp.float32)
    p["merge_ln_b"] = jnp.zeros((4 * E1,), jnp.float32)
    p["merge_w"], p["merge_b"] = _dense(ks[2], 4 * E1, E2)
    p["enc2"] = _init_block(ks[3], E2, HEADS2, WINDOW)
    p["enc_head_ln_g"] = jnp.ones((E2,), jnp.float32)
    p["enc_head_ln_b"] = jnp.zeros((E2,), jnp.float32)
    p["enc_head_w"], p["enc_head_b"] = _dense(ks[4], E2, C_CODE)
    p["dec_head_w"], p["dec_head_b"] = _dense(ks[5], C_CODE, E2)
    p["dec1"] = _init_block(ks[6], E2, HEADS2, WINDOW)
    p["up_ln_g"] = jnp.ones((E2,), jnp.float32)
    p["up_ln_b"] = jnp.zeros((E2,), jnp.float32)
    p["up_w"], p["up_b"] = _dense(ks[7], E2, 4 * E1)
    p["dec2"] = _init_block(ks[8], E1, HEADS1, WINDOW)
    p["out_ln_g"] = jnp.ones((E1,), jnp.float32)
    p["out_ln_b"] = jnp.zeros((E1,), jnp.float32)
    p["out_w"], p["out_b"] = _dense(ks[9], E1, PATCH * PATCH * 3)
    return p


# ----------------------------------------------------------------------------
if __name__ == "__main__":
    key = jax.random.PRNGKey(0)
    pkey, xkey, nkey = jax.random.split(key, 3)
    params = init_params(pkey)

    # small input image, NCHW, values in [0, 1]
    input_image = jax.random.uniform(xkey, (2, 3, 16, 16), jnp.float32)

    recon, CBR, chan_param, mse, loss_G = swin_jscc_forward(
        params, input_image, given_SNR=10.0, noise_key=nkey
    )
    jax.block_until_ready((recon, mse, loss_G))

    assert recon.shape == input_image.shape
    assert bool(jnp.isfinite(mse)) and bool(jnp.isfinite(loss_G))
    print("KERNEL_OK")
</pallas_src>

<mosaic_0001>
module attributes {stable_mosaic.version = 11 : i64} {
  func.func @_fused_linear_kernel(%arg0: i32, %arg1: memref<128x12xf32, #tpu.memory_space<vmem>>, %arg2: memref<12x32xf32, #tpu.memory_space<vmem>>, %arg3: memref<1x32xf32, #tpu.memory_space<vmem>>, %arg4: memref<128x32xf32, #tpu.memory_space<vmem>>) attributes {dimension_semantics = [#tpu.dimension_semantics<parallel>], iteration_bounds = array<i64: 1>, scalar_prefetch = 0 : i64, scratch_operands = 0 : i64, tpu.core_type = #tpu.core_type<tc>, window_params = [{transform_indices = @transform_0, window_bounds = array<i64: 128, 12>}, {pipeline_mode = #tpu.pipeline_mode<synchronous>, transform_indices = @transform_1, window_bounds = array<i64: 12, 32>}, {pipeline_mode = #tpu.pipeline_mode<synchronous>, transform_indices = @transform_2, window_bounds = array<i64: 1, 32>}, {transform_indices = @transform_3, window_bounds = array<i64: 128, 32>}]} {
    %c0 = arith.constant 0 : index
    %c0_0 = arith.constant 0 : index
    %0 = vector.load %arg1[%c0, %c0_0] : memref<128x12xf32, #tpu.memory_space<vmem>>, vector<128x12xf32>
    %c0_1 = arith.constant 0 : index
    %c0_2 = arith.constant 0 : index
    %1 = vector.load %arg2[%c0_1, %c0_2] : memref<12x32xf32, #tpu.memory_space<vmem>>, vector<12x32xf32>
    %cst = arith.constant dense<0.000000e+00> : vector<128x32xf32>
    %2 = tpu.matmul %0, %1, %cst {dimension_numbers = #tpu.dot_dimension_numbers<[1], [0], [0], [1], [0, 0, 1, 1], [], []>} : vector<128x12xf32>, vector<12x32xf32>, vector<128x32xf32> -> vector<128x32xf32>
    %c0_3 = arith.constant 0 : index
    %c0_4 = arith.constant 0 : index
    %3 = vector.load %arg3[%c0_3, %c0_4] : memref<1x32xf32, #tpu.memory_space<vmem>>, vector<1x32xf32>
    %4 = vector.broadcast %3 : vector<1x32xf32> to vector<128x32xf32>
    %5 = arith.addf %2, %4 : vector<128x32xf32>
    %c0_5 = arith.constant 0 : index
    %c0_6 = arith.constant 0 : index
    %6 = vector.load %arg4[%c0_5, %c0_6] : memref<128x32xf32, #tpu.memory_space<vmem>>, vector<128x32xf32>
    tpu.vector_store %arg4[%c0_5, %c0_6], %5 {strides = array<i32>} : memref<128x32xf32, #tpu.memory_space<vmem>>, vector<128x32xf32>,
    return
  }
  func.func @transform_0(%arg0: i32) -> (i32, i32) {
    %c0_i32 = arith.constant 0 : i32
    %c0_i32_0 = arith.constant 0 : i32
    return %arg0, %c0_i32 : i32, i32
  }
  func.func @transform_1(%arg0: i32) -> (i32, i32) {
    %c0_i32 = arith.constant 0 : i32
    %c0_i32_0 = arith.constant 0 : i32
    %c0_i32_1 = arith.constant 0 : i32
    return %c0_i32, %c0_i32_0 : i32, i32
  }
  func.func @transform_2(%arg0: i32) -> (i32, i32) {
    %c0_i32 = arith.constant 0 : i32
    %c0_i32_0 = arith.constant 0 : i32
    %c0_i32_1 = arith.constant 0 : i32
    return %c0_i32, %c0_i32_0 : i32, i32
  }
  func.func @transform_3(%arg0: i32) -> (i32, i32) {
    %c0_i32 = arith.constant 0 : i32
    %c0_i32_0 = arith.constant 0 : i32
    return %arg0, %c0_i32 : i32, i32
  }
}

</mosaic_0001>

<bundles_post_ra>
// kernel: tpu_custom_call.1
= control target key start
LH: loop header
LB: loop body
LE: loop exit
PB: predicated region body
PF: predicated region fallthrough
CT: control target
= control target key end

     0   :  { %vm85_vm0 = vcmask 1043456   ;;  %vm36_vm1 = vcmask 97280   ;;  %vm154_vm2 = vcmask 261120   ;;  %s356_s1 = inlined_call_operand.vmem [shape: f32[12,32], index: 1, kind: input, shape index: {}]   ;;  %s357_s0 = inlined_call_operand.vmem [shape: f32[128,12], index: 0, kind: input, shape index: {}]   ;;  %s358_s2 = inlined_call_operand.vmem [shape: f32[1,32], index: 2, kind: input, shape index: {}]   ;;  %s359_s3 = inlined_call_operand.vmem [shape: f32[128,32], index: 3, kind: output, shape index: {}]  }
   0x1   :  { %v31_v0 = vld [vmem:[%s356_s1 + $0x8] sm:$0xf]  ;;  %v30_v1 = vld [vmem:[%s356_s1] sm:$0xff]  ;;  %v24_v10 = vld [vmem:[%s357_s0 + $0x50] sm:$0xff] }
   0x2   :  { %193 = vmatpush.msk.msra.mxu2 %vm85_vm0, %v31_v0  ;;  %194 = vmatpush.msk.msra.mxu3 %vm85_vm0, %v31_v0  ;;  %v22_v2 = vld [vmem:[%s357_s0 + $0x40] sm:$0xff]  ;;  %v23_v6 = vld [vmem:[%s357_s0 + $0x48] sm:$0xff]  ;;  %v28_v11 = vld [vmem:[%s357_s0 + $0x70] sm:$0xff] }
   0x3   :  { %v26_v3 = vld [vmem:[%s357_s0 + $0x60] sm:$0xff]  ;;  %175 = vmatpush.msk.msra.mxu0 %vm85_vm0, %v31_v0  ;;  %192 = vmatpush.msk.msra.mxu1 %vm85_vm0, %v31_v0  ;;  %v27_v7 = vld [vmem:[%s357_s0 + $0x68] sm:$0xff]  ;;  %v16_v12 = vld [vmem:[%s357_s0 + $0x10] sm:$0xff] }
   0x4   :  { %196 = vmatpush.msra.mxu2 %v30_v1  ;;  %197 = vmatpush.msra.mxu3 %v30_v1  ;;  %v14_v4 = vld [vmem:[%s357_s0] sm:$0xff]  ;;  %v15_v8 = vld [vmem:[%s357_s0 + $0x8] sm:$0xff]  ;;  %v20_v13 = vld [vmem:[%s357_s0 + $0x30] sm:$0xff] }
   0x5   :  { %v18_v5 = vld [vmem:[%s357_s0 + $0x20] sm:$0xff]  ;;  %184 = vmatmul.msk.f32.vlgmr.msra.gmra.mxu2 %vm36_vm1, %v22_v2  ;;  %188 = vmatmul.msk.f32.vlgmr.msra.gmra.mxu3 %vm36_vm1, %v26_v3  ;;  %v19_v9 = vld [vmem:[%s357_s0 + $0x28] sm:$0xff]  ;;  %v25_v14 = vld [vmem:[%s357_s0 + $0x58] sm:$0xff] }
   0x6   :  { %104 = vmatpush.msra.mxu0 %v30_v1  ;;  %195 = vmatpush.msra.mxu1 %v30_v1  ;;  %v29_v15 = vld [vmem:[%s357_s0 + $0x78] sm:$0xff]  ;;  %v198_v18 = vld [vmem:[%s358_s2] ss:$0 sm:$0xff] }
   0x7   :  { %176 = vmatmul.msk.f32.vlgmr.msra.gmra.mxu0 %vm36_vm1, %v14_v4  ;;  %180 = vmatmul.msk.f32.vlgmr.msra.gmra.mxu1 %vm36_vm1, %v18_v5  ;;  %v17_v16 = vld [vmem:[%s357_s0 + $0x18] sm:$0xff] }
   0x8   :  { %v21_v17 = vld [vmem:[%s357_s0 + $0x38] sm:$0xff] }
   0xd   :  { %185 = vmatmul.msk.f32.gmra.mxu2 %vm36_vm1, %v23_v6  ;;  %189 = vmatmul.msk.f32.gmra.mxu3 %vm36_vm1, %v27_v7 }
   0xf   :  { %177 = vmatmul.msk.f32.gmra.mxu0 %vm36_vm1, %v15_v8  ;;  %181 = vmatmul.msk.f32.gmra.mxu1 %vm36_vm1, %v19_v9 }
  0x15   :  { %186 = vmatmul.msk.f32.gmra.mxu2 %vm36_vm1, %v24_v10  ;;  %190 = vmatmul.msk.f32.gmra.mxu3 %vm36_vm1, %v28_v11 }
  0x17   :  { %178 = vmatmul.msk.f32.gmra.mxu0 %vm36_vm1, %v16_v12  ;;  %182 = vmatmul.msk.f32.gmra.mxu1 %vm36_vm1, %v20_v13 }
  0x1d   :  { %187 = vmatmul.msk.f32.gmra.mxu2 %vm36_vm1, %v25_v14  ;;  %191 = vmatmul.msk.f32.gmra.mxu3 %vm36_vm1, %v29_v15 }
  0x1f   :  { %179 = vmatmul.msk.f32.gmra.mxu0 %vm36_vm1, %v17_v16  ;;  %183 = vmatmul.msk.f32.gmra.mxu1 %vm36_vm1, %v21_v17 }
  0x84   :  { %v106_v19 = vpop.f32.mrf.mxu0  ;;  %v118_v20 = vpop.f32.mrf.mxu1 }
  0x85   :  { %v107_v21 = vadd.f32 %v198_v18, %v106_v19  ;;  %v119_v22 = vadd.f32 %v198_v18, %v118_v20 }
  0x87   :  { %155 = vst.msk [vmem:[%s359_s3] sm:$0xff] %vm154_vm2, %v107_v21 }
  0x88   :  { %159 = vst.msk [vmem:[%s359_s3 + $0x20] sm:$0xff] %vm154_vm2, %v119_v22  ;;  %v130_v23 = vpop.f32.mrf.mxu2  ;;  %v142_v24 = vpop.f32.mrf.mxu3 }
  0x89   :  { %v131_v25 = vadd.f32 %v198_v18, %v130_v23  ;;  %v143_v26 = vadd.f32 %v198_v18, %v142_v24 }
  0x8b   :  { %163 = vst.msk [vmem:[%s359_s3 + $0x40] sm:$0xff] %vm154_vm2, %v131_v25 }
  0x8c   :  { %167 = vst.msk [vmem:[%s359_s3 + $0x60] sm:$0xff] %vm154_vm2, %v143_v26  ;;  %v109_v27 = vpop.f32.mrf.mxu0  ;;  %v121_v28 = vpop.f32.mrf.mxu1 }
  0x8d   :  { %v110_v29 = vadd.f32 %v198_v18, %v109_v27  ;;  %v122_v30 = vadd.f32 %v198_v18, %v121_v28 }
  0x8f   :  { %156 = vst.msk [vmem:[%s359_s3 + $0x8] sm:$0xff] %vm154_vm2, %v110_v29 }
  0x90   :  { %160 = vst.msk [vmem:[%s359_s3 + $0x28] sm:$0xff] %vm154_vm2, %v122_v30  ;;  %v133_v31 = vpop.f32.mrf.mxu2  ;;  %v145_v32 = vpop.f32.mrf.mxu3 }
  0x91   :  { %v134_v33 = vadd.f32 %v198_v18, %v133_v31  ;;  %v146_v34 = vadd.f32 %v198_v18, %v145_v32 }
  0x93   :  { %164 = vst.msk [vmem:[%s359_s3 + $0x48] sm:$0xff] %vm154_vm2, %v134_v33 }
  0x94   :  { %168 = vst.msk [vmem:[%s359_s3 + $0x68] sm:$0xff] %vm154_vm2, %v146_v34  ;;  %v112_v35 = vpop.f32.mrf.mxu0  ;;  %v124_v36 = vpop.f32.mrf.mxu1 }
  0x95   :  { %v113_v37 = vadd.f32 %v198_v18, %v112_v35  ;;  %v125_v38 = vadd.f32 %v198_v18, %v124_v36 }
  0x97   :  { %157 = vst.msk [vmem:[%s359_s3 + $0x10] sm:$0xff] %vm154_vm2, %v113_v37 }
  0x98   :  { %161 = vst.msk [vmem:[%s359_s3 + $0x30] sm:$0xff] %vm154_vm2, %v125_v38  ;;  %v136_v39 = vpop.f32.mrf.mxu2  ;;  %v148_v40 = vpop.f32.mrf.mxu3 }
  0x99   :  { %v137_v41 = vadd.f32 %v198_v18, %v136_v39  ;;  %v149_v42 = vadd.f32 %v198_v18, %v148_v40 }
  0x9b   :  { %165 = vst.msk [vmem:[%s359_s3 + $0x50] sm:$0xff] %vm154_vm2, %v137_v41 }
  0x9c   :  { %169 = vst.msk [vmem:[%s359_s3 + $0x70] sm:$0xff] %vm154_vm2, %v149_v42  ;;  %v115_v43 = vpop.f32.mrf.mxu0  ;;  %v127_v44 = vpop.f32.mrf.mxu1 }
  0x9d   :  { %v116_v45 = vadd.f32 %v198_v18, %v115_v43  ;;  %v128_v46 = vadd.f32 %v198_v18, %v127_v44 }
  0x9f   :  { %158 = vst.msk [vmem:[%s359_s3 + $0x18] sm:$0xff] %vm154_vm2, %v116_v45 }
  0xa0   :  { %162 = vst.msk [vmem:[%s359_s3 + $0x38] sm:$0xff] %vm154_vm2, %v128_v46  ;;  %v139_v47 = vpop.f32.mrf.mxu2  ;;  %v151_v48 = vpop.f32.mrf.mxu3 }
  0xa1   :  { %v140_v49 = vadd.f32 %v198_v18, %v139_v47  ;;  %v152_v50 = vadd.f32 %v198_v18, %v151_v48 }
  0xa3   :  { %166 = vst.msk [vmem:[%s359_s3 + $0x58] sm:$0xff] %vm154_vm2, %v140_v49 }
  0xa4   :  { %170 = vst.msk [vmem:[%s359_s3 + $0x78] sm:$0xff] %vm154_vm2, %v152_v50 }

</bundles_post_ra>
